<compile_context>
chip_gen: v5e
topology: v5e:2x2
jax: 0.10.0
libtpu: 0.0.40
codegen_flags: <defaults>
</compile_context>

<pallas_src>
import functools

import jax
import jax.numpy as jnp
from jax.experimental import pallas as pl
from jax.experimental.pallas import tpu as pltpu


def _quant_kernel(scale_ref, x_ref, o_ref, *, bits: int):
    """Symmetric uniform mid-tread fake-quant on one (TM, LANE) tile."""
    qmax = 2 ** (bits - 1) - 1
    scale = scale_ref[0]
    # Compute in f32 regardless of storage dtype: matches torch numerics; the
    # kernel is HBM-bound on all generations so the VALU has ample slack.
    # (bf16-native compute on v6e/v7x only matters if a profile shows VALU
    # saturation; it does not for this op.)
    x = x_ref[...].astype(jnp.float32)
    t_q = jnp.round(x / scale)                 # matches torch.round(t / scale)
    t_q = jnp.clip(t_q, float(-qmax - 1), float(qmax))
    o_ref[...] = (t_q * scale).astype(o_ref.dtype)


def _fake_quant_jax(x, scale, bits):
    """Plain-JAX reference / ragged fallback (single fused elementwise pass)."""
    qmax = 2 ** (bits - 1) - 1
    s = jnp.asarray(scale, jnp.float32)
    t_q = jnp.clip(jnp.round(x.astype(jnp.float32) / s),
                   float(-qmax - 1), float(qmax))
    return (t_q * s).astype(x.dtype)


def quant_stub_forward(x: jax.Array, scale: jax.Array, bits: int = 8,
                       donate_x: bool = False) -> jax.Array:
    """Pallas equivalent of QuantStub.forward (symmetric_uniform_quant)."""
    orig_shape = x.shape
    orig_dtype = x.dtype
    total = x.size
    itemsize = jnp.dtype(orig_dtype).itemsize

    # ---- lane-dense 2D layout (free reshape for contiguous row-major x) ----
    lane = None
    for cand in (1024, 512, 256, 128):
        if total % cand == 0:
            lane = cand
            break
    if lane is None or total == 0:
        # TODO(synk): ragged totals use one fused pure-JAX elementwise pass
        # (already at the HBM roofline) instead of pad+kernel+slice which
        # would cost up to two extra full HBM passes of the tensor.
        return _fake_quant_jax(x, scale, bits)

    rows = total // lane
    x2d = jnp.ravel(x).reshape(rows, lane)

    # ---- ~2 MiB row tiles: big enough to amortize the ~0.35 us per-grid-step
    # overhead at v7x's ~3.2 TB/s HBM, small enough that double-buffered
    # in+out (4x) stays well under v5e's 16 MiB default scoped VMEM. ----
    target_block_bytes = 2 << 20
    tm = max(8, (target_block_bytes // (lane * itemsize)) // 8 * 8)
    if rows <= tm:
        tm = rows   # single full-extent block (legal even if rows not 8-aligned)
    grid = (pl.cdiv(rows, tm),)

    # 1-D SMEM scalar (a (1,1) 2-D SMEM block would pad to a full word tile).
    scale_smem = jnp.asarray(scale, dtype=jnp.float32).reshape(1)

    kernel = functools.partial(_quant_kernel, bits=bits)

    def build(dim_sem):
        return pl.pallas_call(
            kernel,
            out_shape=jax.ShapeDtypeStruct((rows, lane), orig_dtype),
            grid=grid,
            in_specs=[
                pl.BlockSpec(memory_space=pltpu.MemorySpace.SMEM),  # scale
                pl.BlockSpec((tm, lane), lambda i: (i, 0)),
            ],
            out_specs=pl.BlockSpec((tm, lane), lambda i: (i, 0)),
            compiler_params=pltpu.CompilerParams(
                dimension_semantics=(dim_sem,),
                vmem_limit_bytes=32 * 1024 * 1024,
            ),
            cost_estimate=pl.CostEstimate(
                flops=4 * total,
                transcendentals=0,
                bytes_accessed=2 * total * itemsize,  # honest, unpadded hint
            ),
            input_output_aliases=({1: 0} if donate_x else {}),
        )

    core_parallel = getattr(pltpu, "CORE_PARALLEL", "parallel")
    try:
        # CORE_PARALLEL shards the row-tile axis across both TensorCores on
        # v7x (2 TC/chip, per-TC HBM bandwidth); equivalent to "parallel" on
        # single-TC v5e/v6e.
        out2d = build(core_parallel)(scale_smem, x2d)
    except Exception:
        out2d = build("parallel")(scale_smem, x2d)

    return out2d.reshape(orig_shape)


if __name__ == "__main__":
    key = jax.random.PRNGKey(0)
    # NCHW input, matching the PyTorch convention
    x = jax.random.normal(key, (2, 4, 16, 16), dtype=jnp.float32) * 3.0

    # QuantStub.__init__: scale buffer initialized to 1.0, bits=8
    bits = 8
    scale = jnp.array(1.0, dtype=jnp.float32)
    y = quant_stub_forward(x, scale, bits=bits)
    jax.block_until_ready(y)
    ref = _fake_quant_jax(x, scale, bits)
    assert y.shape == x.shape and y.dtype == x.dtype
    assert float(jnp.max(jnp.abs(y - ref))) <= 1e-6

    # Non-trivial scale (power of two -> exact division, deterministic check).
    scale2 = jnp.array(0.25, dtype=jnp.float32)
    y2 = quant_stub_forward(x, scale2, bits=bits)
    jax.block_until_ready(y2)
    assert float(jnp.max(jnp.abs(y2 - _fake_quant_jax(x, scale2, bits)))) <= 1e-6

    # Low-bit case that actually engages the clamp.
    y3 = quant_stub_forward(x, scale2, bits=5)
    jax.block_until_ready(y3)
    assert float(jnp.max(jnp.abs(y3 - _fake_quant_jax(x, scale2, 5)))) <= 1e-6

    # Ragged total -> fused pure-JAX fallback path (no pad/slice HBM passes).
    x4 = jax.random.normal(jax.random.PRNGKey(1), (3, 5, 7), dtype=jnp.float32)
    y4 = quant_stub_forward(x4, scale2, bits=bits)
    jax.block_until_ready(y4)
    assert y4.shape == x4.shape

    print("KERNEL_OK")
</pallas_src>

<mosaic_0001>
module attributes {stable_mosaic.version = 11 : i64} {
  func.func @_quant_kernel(%arg0: i32, %arg1: memref<1xf32, #tpu.memory_space<smem>>, %arg2: memref<2x1024xf32, #tpu.memory_space<vmem>>, %arg3: memref<2x1024xf32, #tpu.memory_space<vmem>>) attributes {dimension_semantics = [#tpu.dimension_semantics<core_parallel>], iteration_bounds = array<i64: 1>, scalar_prefetch = 0 : i64, scratch_operands = 0 : i64, tpu.core_type = #tpu.core_type<tc>, window_params = [{transform_indices = @transform_0, window_bounds = array<i64: 1>}, {transform_indices = @transform_1, window_bounds = array<i64: 2, 1024>}, {transform_indices = @transform_2, window_bounds = array<i64: 2, 1024>}]} {
    %c0 = arith.constant 0 : index
    %0 = memref.load %arg1[%c0] : memref<1xf32, #tpu.memory_space<smem>>
    %c0_0 = arith.constant 0 : index
    %c0_1 = arith.constant 0 : index
    %1 = vector.load %arg2[%c0_0, %c0_1] : memref<2x1024xf32, #tpu.memory_space<vmem>>, vector<2x1024xf32>
    %2 = vector.broadcast %0 : f32 to vector<2x1024xf32>
    %3 = arith.divf %1, %2 : vector<2x1024xf32>
    %4 = math.roundeven %3 : vector<2x1024xf32>
    %cst = arith.constant -1.280000e+02 : f32
    %cst_2 = arith.constant 1.270000e+02 : f32
    %5 = vector.broadcast %cst : f32 to vector<2x1024xf32>
    %6 = arith.maximumf %5, %4 : vector<2x1024xf32>
    %7 = vector.broadcast %cst_2 : f32 to vector<2x1024xf32>
    %8 = arith.minimumf %7, %6 : vector<2x1024xf32>
    %9 = vector.broadcast %0 : f32 to vector<2x1024xf32>
    %10 = arith.mulf %8, %9 : vector<2x1024xf32>
    %c0_3 = arith.constant 0 : index
    %c0_4 = arith.constant 0 : index
    %11 = vector.load %arg3[%c0_3, %c0_4] : memref<2x1024xf32, #tpu.memory_space<vmem>>, vector<2x1024xf32>
    tpu.vector_store %arg3[%c0_3, %c0_4], %10 {strides = array<i32>} : memref<2x1024xf32, #tpu.memory_space<vmem>>, vector<2x1024xf32>,
    return
  }
  func.func @transform_0(%arg0: i32) -> i32 {
    %c0_i32 = arith.constant 0 : i32
    %c0_i32_0 = arith.constant 0 : i32
    return %c0_i32 : i32
  }
  func.func @transform_1(%arg0: i32) -> (i32, i32) {
    %c0_i32 = arith.constant 0 : i32
    %c0_i32_0 = arith.constant 0 : i32
    return %arg0, %c0_i32 : i32, i32
  }
  func.func @transform_2(%arg0: i32) -> (i32, i32) {
    %c0_i32 = arith.constant 0 : i32
    %c0_i32_0 = arith.constant 0 : i32
    return %arg0, %c0_i32 : i32, i32
  }
}

module attributes {stable_mosaic.version = 11 : i64} {
  func.func @_quant_kernel(%arg0: i32, %arg1: memref<1xf32, #tpu.memory_space<smem>>, %arg2: memref<2x1024xf32, #tpu.memory_space<vmem>>, %arg3: memref<2x1024xf32, #tpu.memory_space<vmem>>) attributes {dimension_semantics = [#tpu.dimension_semantics<parallel>], iteration_bounds = array<i64: 1>, scalar_prefetch = 0 : i64, scratch_operands = 0 : i64, tpu.core_type = #tpu.core_type<tc>, window_params = [{transform_indices = @transform_0, window_bounds = array<i64: 1>}, {transform_indices = @transform_1, window_bounds = array<i64: 2, 1024>}, {transform_indices = @transform_2, window_bounds = array<i64: 2, 1024>}]} {
    %c0 = arith.constant 0 : index
    %0 = memref.load %arg1[%c0] : memref<1xf32, #tpu.memory_space<smem>>
    %c0_0 = arith.constant 0 : index
    %c0_1 = arith.constant 0 : index
    %1 = vector.load %arg2[%c0_0, %c0_1] : memref<2x1024xf32, #tpu.memory_space<vmem>>, vector<2x1024xf32>
    %2 = vector.broadcast %0 : f32 to vector<2x1024xf32>
    %3 = arith.divf %1, %2 : vector<2x1024xf32>
    %4 = math.roundeven %3 : vector<2x1024xf32>
    %cst = arith.constant -1.280000e+02 : f32
    %cst_2 = arith.constant 1.270000e+02 : f32
    %5 = vector.broadcast %cst : f32 to vector<2x1024xf32>
    %6 = arith.maximumf %5, %4 : vector<2x1024xf32>
    %7 = vector.broadcast %cst_2 : f32 to vector<2x1024xf32>
    %8 = arith.minimumf %7, %6 : vector<2x1024xf32>
    %9 = vector.broadcast %0 : f32 to vector<2x1024xf32>
    %10 = arith.mulf %8, %9 : vector<2x1024xf32>
    %c0_3 = arith.constant 0 : index
    %c0_4 = arith.constant 0 : index
    %11 = vector.load %arg3[%c0_3, %c0_4] : memref<2x1024xf32, #tpu.memory_space<vmem>>, vector<2x1024xf32>
    tpu.vector_store %arg3[%c0_3, %c0_4], %10 {strides = array<i32>} : memref<2x1024xf32, #tpu.memory_space<vmem>>, vector<2x1024xf32>,
    return
  }
  func.func @transform_0(%arg0: i32) -> i32 {
    %c0_i32 = arith.constant 0 : i32
    %c0_i32_0 = arith.constant 0 : i32
    return %c0_i32 : i32
  }
  func.func @transform_1(%arg0: i32) -> (i32, i32) {
    %c0_i32 = arith.constant 0 : i32
    %c0_i32_0 = arith.constant 0 : i32
    return %arg0, %c0_i32 : i32, i32
  }
  func.func @transform_2(%arg0: i32) -> (i32, i32) {
    %c0_i32 = arith.constant 0 : i32
    %c0_i32_0 = arith.constant 0 : i32
    return %arg0, %c0_i32 : i32, i32
  }
}

</mosaic_0001>

<bundles_post_ra>
// kernel: tpu_custom_call.1
= control target key start
LH: loop header
LB: loop body
LE: loop exit
PB: predicated region body
PF: predicated region fallthrough
CT: control target
= control target key end

     0   :  { %s179_s9 = sld [smem:[#allocation0]]   ;;  %s201_s0 = inlined_call_operand.<no memory space> [shape: f32[1], index: 0, kind: input, shape index: {}]   ;;  %s202_s1 = inlined_call_operand.hbm [shape: f32[2,1024], index: 1, kind: input, shape index: {}]   ;;  %s203_s2 = inlined_call_operand.hbm [shape: f32[2,1024], index: 2, kind: output, shape index: {}]  }
   0x1   :  { %8 = vsyncpa [#allocation4], 0 }
   0x2   :  { %9 = vsyncpa [#allocation5], 0  ;;  %s162_s14 = smov [#allocation3]   ;;  %s114_s21 = scalar_lea.hbm %s202_s1, 16 }
   0x3   :  { %s22_s15 = sshll.u32 %s162_s14, 4  ;;  %s23_s15 = int_to_ptr.vmem [resolvable:$true] %s22_s15 }
   0x6   :  { %s88_s10 = sshll.u32 %s179_s9, 4 }
   0x7   :  { %s18_s13 = scalar_lea.hbm %s202_s1, %s88_s10 }
   0x8   :  { %s20_s16 = sshll.u32 %s18_s13, 4  ;;  %s21_s16 = int_to_ptr.hbm [resolvable:$true] %s20_s16 }
   0x9   :  { %s110_s17 = sshra.s32 %s21_s16, 4  ;;  %s111_s17 = int_to_ptr.hbm [resolvable:$true] %s110_s17 }
   0xa   :  { %s112_s18 = scalar_lea.hbm %s111_s17, 16 }
   0xb   :  { %p113_p0 = scmp.ne.s32.totalorder %s111_s17, %s112_s18  ;;  %p116_p1 = scmp.lt.s32.totalorder %s114_s21, %s112_s18 }
   0xd   :  { %p118_p2 = pnand %p116_p1, %p113_p0 }
   0xf   :  { %121 = shalt.err (!%p118_p2)
}
  0x10   :  { %25 = dma.hbm_to_vmem [thread:$0]  %s21_s16, 256, %s23_s15, [#allocation4]  }
  0x11   :  { %158 = dma.done.wait [#allocation4], 256  }
  0x12   :  { %159 = vsyncadd [#allocation4], 4294967040  ;;  %v33_v0 = vstv %s201_s0  ;;  %v31_v9 = vld [vmem:[#allocation3] sm:$0xff]  ;;  %v32_v10 = vld [vmem:[#allocation3 + $0x8] sm:$0xff]  ;;  %s66_s24 = scalar_lea.hbm %s203_s2, %s88_s10  ;;  %s163_s25 = smov [#allocation6]  }
  0x13   :  { %108 = vrcp.f32 %v33_v0  ;;  %v45_v3 = vand.u32 2147483648, %v33_v0  ;;  %vm39_vm0 = vweird.f32 %v33_v0  ;;  %v43_v5 = vand.u32 2147483647, %v33_v0  ;;  %s68_s26 = sshll.u32 %s163_s25, 4  ;;  %s70_s27 = sshll.u32 %s66_s24, 4  ;;  %s69_s26 = int_to_ptr.vmem [resolvable:$true] %s68_s26  ;;  %s71_s27 = int_to_ptr.hbm [resolvable:$true] %s70_s27 }
  0x14   :  { %s146_s28 = sshra.s32 %s71_s27, 4  ;;  %s150_s4 = scalar_lea.hbm %s203_s2, 16  ;;  %s147_s28 = int_to_ptr.hbm [resolvable:$true] %s146_s28 }
  0x15   :  { %v46_v7 = vor.u32 1.1754944e-38, %v45_v3  ;;  %vm44_vm3 = vcmp.eq.f32.partialorder %v43_v5, 8.507059e+37  ;;  %s148_s29 = scalar_lea.hbm %s147_s28, 16 }
  0x16   :  { %p149_p3 = scmp.ne.s32.totalorder %s147_s28, %s148_s29  ;;  %p152_p4 = scmp.lt.s32.totalorder %s150_s4, %s148_s29 }
  0x18   :  { %p154_p5 = pnand %p152_p4, %p149_p3 }
  0x19   :  { %v109_v1 = vpop.eup %108 }
  0x1a   :  { %v35_v2 = vmul.f32 %v109_v1, %v33_v0  ;;  %vm40_vm1 = vweird.f32 %v109_v1 }
  0x1b   :  { %vm41_vm2 = vmor %vm39_vm0, %vm40_vm1 }
  0x1c   :  { %v36_v4 = vsub.f32 1.0, %v35_v2 }
  0x1e   :  { %v37_v6 = vmul.f32 %v109_v1, %v36_v4 }
  0x20   :  { %v38_v8 = vadd.f32 %v109_v1, %v37_v6 }
  0x22   :  { %v42_v11 = vsel %vm41_vm2, %v109_v1, %v38_v8 }
  0x23   :  { %v47_v12 = vsel %vm44_vm3, %v46_v7, %v42_v11 }
  0x24   :  { %v48_v13 = vmul.f32 %v47_v12, %v31_v9  ;;  %v49_v14 = vmul.f32 %v47_v12, %v32_v10 }
  0x26   :  { %v92_v15 = vcvt.f32.s32 %v48_v13  ;;  %v90_v16 = vand.u32 2147483647, %v48_v13  ;;  %v100_v17 = vcvt.f32.s32 %v49_v14  ;;  %v95_v19 = vand.u32 2147483648, %v48_v13 }
  0x27   :  { %v98_v20 = vand.u32 2147483647, %v49_v14  ;;  %v103_v22 = vand.u32 2147483648, %v49_v14 }
  0x28   :  { %v93_v18 = vcvt.s32.f32 %v92_v15  ;;  %v101_v21 = vcvt.s32.f32 %v100_v17  ;;  %vm91_vm4 = vcmp.lt.f32.partialorder %v90_v16, 8388608.0 }
  0x29   :  { %vm99_vm5 = vcmp.lt.f32.partialorder %v98_v20, 8388608.0 }
  0x2a   :  { %v94_v23 = vand.u32 2147483647, %v93_v18  ;;  %v102_v24 = vand.u32 2147483647, %v101_v21 }
  0x2c   :  { %v96_v25 = vor.u32 %v95_v19, %v94_v23  ;;  %v104_v26 = vor.u32 %v103_v22, %v102_v24 }
  0x2e   :  { %v97_v27 = vsel %vm91_vm4, %v96_v25, %v48_v13  ;;  %v105_v29 = vsel %vm99_vm5, %v104_v26, %v49_v14 }
  0x2f   :  { %v52_v28 = vmax.f32 %v97_v27, -128.0  ;;  %v53_v30 = vmax.f32 %v105_v29, -128.0 }
  0x31   :  { %v54_v31 = vmin.f32 %v52_v28, 127.0  ;;  %v55_v32 = vmin.f32 %v53_v30, 127.0 }
  0x33   :  { %v56_v33 = vmul.f32 %v54_v31, %v33_v0  ;;  %v57_v34 = vmul.f32 %v55_v32, %v33_v0 }
  0x35   :  { %58 = vst [vmem:[#allocation6] sm:$0xff] %v56_v33 }
  0x36   :  { %59 = vst [vmem:[#allocation6 + $0x8] sm:$0xff] %v57_v34 }
  0x37   :  { %157 = shalt.err (!%p154_p5)
}
  0x38   :  { %73 = dma.vmem_to_hbm [thread:$0]  %s69_s26, 256, %s71_s27, [#allocation5]  }
  0x39   :  { %160 = dma.done.wait [#allocation5], 256  }
  0x3a   :  { %161 = vsyncadd [#allocation5], 4294967040 }
  0x3b   :  { %78 = vsyncpa [#allocation4], 1 }
  0x3c   :  { %79 = vsyncpa [#allocation5], 1 }

// kernel: tpu_custom_call.1
= control target key start
LH: loop header
LB: loop body
LE: loop exit
PB: predicated region body
PF: predicated region fallthrough
CT: control target
= control target key end

     0   :  { %8 = vsyncpa [#allocation4], 0  ;;  %s172_s0 = inlined_call_operand.<no memory space> [shape: f32[1], index: 0, kind: input, shape index: {}]   ;;  %s173_s1 = inlined_call_operand.hbm [shape: f32[2,1024], index: 1, kind: input, shape index: {}]   ;;  %s174_s2 = inlined_call_operand.hbm [shape: f32[2,1024], index: 2, kind: output, shape index: {}]  }
   0x1   :  { %9 = vsyncpa [#allocation5], 0  ;;  %s17_s11 = sshll.u32 %s173_s1, 4  ;;  %s146_s12 = smov [#allocation3]   ;;  %s18_s11 = int_to_ptr.hbm [resolvable:$true] %s17_s11 }
   0x2   :  { %s19_s13 = sshll.u32 %s146_s12, 4  ;;  %s20_s13 = int_to_ptr.vmem [resolvable:$true] %s19_s13 }
   0x3   :  { %22 = dma.hbm_to_vmem [thread:$0]  %s18_s11, 256, %s20_s13, [#allocation4]  }
   0x4   :  { %142 = dma.done.wait [#allocation4], 256  }
   0x5   :  { %143 = vsyncadd [#allocation4], 4294967040  ;;  %v30_v0 = vstv %s172_s0  ;;  %v28_v9 = vld [vmem:[#allocation3] sm:$0xff]  ;;  %v29_v10 = vld [vmem:[#allocation3 + $0x8] sm:$0xff]  ;;  %s147_s0 = smov [#allocation6]   ;;  %s64_s18 = sshll.u32 %s174_s2, 4  ;;  %s65_s18 = int_to_ptr.hbm [resolvable:$true] %s64_s18 }
   0x6   :  { %92 = vrcp.f32 %v30_v0  ;;  %v42_v3 = vand.u32 2147483648, %v30_v0  ;;  %vm36_vm0 = vweird.f32 %v30_v0  ;;  %v40_v5 = vand.u32 2147483647, %v30_v0  ;;  %s62_s1 = sshll.u32 %s147_s0, 4  ;;  %s63_s1 = int_to_ptr.vmem [resolvable:$true] %s62_s1 }
   0x8   :  { %v43_v7 = vor.u32 1.1754944e-38, %v42_v3  ;;  %vm41_vm3 = vcmp.eq.f32.partialorder %v40_v5, 8.507059e+37 }
   0xc   :  { %v93_v1 = vpop.eup %92 }
   0xd   :  { %v32_v2 = vmul.f32 %v93_v1, %v30_v0  ;;  %vm37_vm1 = vweird.f32 %v93_v1 }
   0xe   :  { %vm38_vm2 = vmor %vm36_vm0, %vm37_vm1 }
   0xf   :  { %v33_v4 = vsub.f32 1.0, %v32_v2 }
  0x11   :  { %v34_v6 = vmul.f32 %v93_v1, %v33_v4 }
  0x13   :  { %v35_v8 = vadd.f32 %v93_v1, %v34_v6 }
  0x15   :  { %v39_v11 = vsel %vm38_vm2, %v93_v1, %v35_v8 }
  0x16   :  { %v44_v12 = vsel %vm41_vm3, %v43_v7, %v39_v11 }
  0x17   :  { %v45_v13 = vmul.f32 %v44_v12, %v28_v9  ;;  %v46_v14 = vmul.f32 %v44_v12, %v29_v10 }
  0x19   :  { %v76_v15 = vcvt.f32.s32 %v45_v13  ;;  %v74_v16 = vand.u32 2147483647, %v45_v13  ;;  %v84_v17 = vcvt.f32.s32 %v46_v14  ;;  %v79_v19 = vand.u32 2147483648, %v45_v13 }
  0x1a   :  { %v82_v20 = vand.u32 2147483647, %v46_v14  ;;  %v87_v22 = vand.u32 2147483648, %v46_v14 }
  0x1b   :  { %v77_v18 = vcvt.s32.f32 %v76_v15  ;;  %v85_v21 = vcvt.s32.f32 %v84_v17  ;;  %vm75_vm4 = vcmp.lt.f32.partialorder %v74_v16, 8388608.0 }
  0x1c   :  { %vm83_vm5 = vcmp.lt.f32.partialorder %v82_v20, 8388608.0 }
  0x1d   :  { %v78_v23 = vand.u32 2147483647, %v77_v18  ;;  %v86_v24 = vand.u32 2147483647, %v85_v21 }
  0x1f   :  { %v80_v25 = vor.u32 %v79_v19, %v78_v23  ;;  %v88_v26 = vor.u32 %v87_v22, %v86_v24 }
  0x21   :  { %v81_v27 = vsel %vm75_vm4, %v80_v25, %v45_v13  ;;  %v89_v29 = vsel %vm83_vm5, %v88_v26, %v46_v14 }
  0x22   :  { %v49_v28 = vmax.f32 %v81_v27, -128.0  ;;  %v50_v30 = vmax.f32 %v89_v29, -128.0 }
  0x24   :  { %v51_v31 = vmin.f32 %v49_v28, 127.0  ;;  %v52_v32 = vmin.f32 %v50_v30, 127.0 }
  0x26   :  { %v53_v33 = vmul.f32 %v51_v31, %v30_v0  ;;  %v54_v34 = vmul.f32 %v52_v32, %v30_v0 }
  0x28   :  { %55 = vst [vmem:[#allocation6] sm:$0xff] %v53_v33 }
  0x29   :  { %56 = vst [vmem:[#allocation6 + $0x8] sm:$0xff] %v54_v34 }
  0x2a   :  { %67 = dma.vmem_to_hbm [thread:$0]  %s63_s1, 256, %s65_s18, [#allocation5]  }
  0x2b   :  { %144 = dma.done.wait [#allocation5], 256  }
  0x2c   :  { %145 = vsyncadd [#allocation5], 4294967040 }
  0x2d   :  { %72 = vsyncpa [#allocation4], 1 }
  0x2e   :  { %73 = vsyncpa [#allocation5], 1 }

</bundles_post_ra>
